<compile_context>
chip_gen: v6e
topology: v6e:2x2x1
jax: 0.10.0
libtpu: 0.0.40
codegen_flags: <defaults>
</compile_context>

<pallas_src>
import math

import jax
import jax.numpy as jnp
from jax.experimental import pallas as pl
from jax.experimental.pallas import tpu as pltpu


def gated_tanh_kernel(x_ref, o_ref):
    # x_ref: (1, C, TILE_T)      both channel halves of one time tile
    # o_ref: (1, C//2, TILE_T)   gated output for the same tile
    c_half = o_ref.shape[1]
    s = x_ref[0, :c_half, :].astype(jnp.float32)
    t = x_ref[0, c_half:, :].astype(jnp.float32)
    o_ref[0] = (jax.nn.sigmoid(s) * jnp.tanh(t)).astype(o_ref.dtype)


def _choose_tile_t(T, max_tile=2048):
    """Largest multiple-of-128 divisor of T that is <= max_tile (else T)."""
    if T <= max_tile:
        return T
    for cand in range(max_tile, 127, -128):
        if T % cand == 0:
            return cand
    return T


def gated_tanh_forward(x):
    """x: (B, C, *spatial). Returns sigmoid(x[:, :C//2]) * tanh(x[:, C//2:])."""
    B, C = x.shape[0], x.shape[1]
    assert C % 2 == 0, "channel dim must be even for GatedTanh"
    c_half = C // 2
    spatial = x.shape[2:]
    T = int(math.prod(spatial)) if spatial else 1

    x3 = x.reshape(B, C, T)                       # NC(T) — T lives on lanes
    tile_t = _choose_tile_t(T)
    grid = (B, T // tile_t)

    # VMEM budget: double-buffered in + out tiles, with headroom; cap for v7x.
    block_bytes = (C + c_half) * tile_t * x3.dtype.itemsize
    vmem_limit = int(min(max(4 * block_bytes + (4 << 20), 16 << 20), 48 << 20))

    out = pl.pallas_call(
        gated_tanh_kernel,
        out_shape=jax.ShapeDtypeStruct((B, c_half, T), x.dtype),
        grid=grid,
        in_specs=[pl.BlockSpec((1, C, tile_t), lambda b, t: (b, 0, t))],
        out_specs=pl.BlockSpec((1, c_half, tile_t), lambda b, t: (b, 0, t)),
        compiler_params=pltpu.CompilerParams(
            dimension_semantics=("parallel", "parallel"),
            vmem_limit_bytes=vmem_limit),
    )(x3)

    return out.reshape((B, c_half) + spatial)


def gated_tanh_reference(x):
    """Pure-JAX reference matching the PyTorch module."""
    c_half = x.shape[1] // 2
    s = x[:, :c_half]
    t = x[:, c_half:]
    return jax.nn.sigmoid(s) * jnp.tanh(t)


if __name__ == "__main__":
    B, C, T = 2, 8, 16
    key = jax.random.PRNGKey(0)
    x = jax.random.normal(key, (B, C, T), jnp.float32)

    out = jax.block_until_ready(gated_tanh_forward(x))
    ref = jax.block_until_ready(gated_tanh_reference(x))

    assert out.shape == (B, C // 2, T), out.shape
    assert jnp.allclose(out, ref, atol=1e-6, rtol=1e-6), (
        float(jnp.max(jnp.abs(out - ref))))

    print("KERNEL_OK")
</pallas_src>

<mosaic_0001>
module attributes {stable_mosaic.version = 11 : i64} {
  func.func @gated_tanh_kernel(%arg0: i32, %arg1: i32, %arg2: memref<1x8x16xf32, #tpu.memory_space<vmem>>, %arg3: memref<1x4x16xf32, #tpu.memory_space<vmem>>) attributes {dimension_semantics = [#tpu.dimension_semantics<parallel>, #tpu.dimension_semantics<parallel>], iteration_bounds = array<i64: 2, 1>, scalar_prefetch = 0 : i64, scratch_operands = 0 : i64, tpu.core_type = #tpu.core_type<tc>, window_params = [{transform_indices = @transform_0, window_bounds = array<i64: 1, 8, 16>}, {transform_indices = @transform_1, window_bounds = array<i64: 1, 4, 16>}]} {
    %c0 = arith.constant 0 : index
    %c0_0 = arith.constant 0 : index
    %c0_1 = arith.constant 0 : index
    %0 = vector.load %arg2[%c0, %c0_0, %c0_1] : memref<1x8x16xf32, #tpu.memory_space<vmem>>, vector<1x4x16xf32>
    %1 = vector.shape_cast %0 : vector<1x4x16xf32> to vector<4x16xf32>
    %c0_2 = arith.constant 0 : index
    %c4 = arith.constant 4 : index
    %c0_3 = arith.constant 0 : index
    %2 = vector.load %arg2[%c0_2, %c4, %c0_3] : memref<1x8x16xf32, #tpu.memory_space<vmem>>, vector<1x4x16xf32>
    %3 = vector.shape_cast %2 : vector<1x4x16xf32> to vector<4x16xf32>
    %4 = arith.negf %1 : vector<4x16xf32>
    %5 = math.exp %4 : vector<4x16xf32>
    %cst = arith.constant 1.000000e+00 : f32
    %6 = vector.broadcast %cst : f32 to vector<4x16xf32>
    %7 = arith.addf %6, %5 : vector<4x16xf32>
    %8 = arith.divf %6, %7 : vector<4x16xf32>
    %9 = math.tanh %3 : vector<4x16xf32>
    %10 = arith.mulf %8, %9 : vector<4x16xf32>
    %c0_4 = arith.constant 0 : index
    %c0_5 = arith.constant 0 : index
    %c0_6 = arith.constant 0 : index
    %11 = vector.load %arg3[%c0_4, %c0_5, %c0_6] : memref<1x4x16xf32, #tpu.memory_space<vmem>>, vector<1x4x16xf32>
    %12 = vector.shape_cast %11 : vector<1x4x16xf32> to vector<4x16xf32>
    %13 = vector.shape_cast %10 : vector<4x16xf32> to vector<1x4x16xf32>
    tpu.vector_store %arg3[%c0_4, %c0_5, %c0_6], %13 {strides = array<i32>} : memref<1x4x16xf32, #tpu.memory_space<vmem>>, vector<1x4x16xf32>,
    return
  }
  func.func @transform_0(%arg0: i32, %arg1: i32) -> (i32, i32, i32) {
    %c0_i32 = arith.constant 0 : i32
    %c0_i32_0 = arith.constant 0 : i32
    return %arg0, %c0_i32, %arg1 : i32, i32, i32
  }
  func.func @transform_1(%arg0: i32, %arg1: i32) -> (i32, i32, i32) {
    %c0_i32 = arith.constant 0 : i32
    %c0_i32_0 = arith.constant 0 : i32
    return %arg0, %c0_i32, %arg1 : i32, i32, i32
  }
}

</mosaic_0001>

<bundles_post_ra>
// kernel: tpu_custom_call.1
= control target key start
LH: loop header
LB: loop body
LE: loop exit
PB: predicated region body
PF: predicated region fallthrough
CT: control target
= control target key end

     0   :  { %6 = vsyncpa [#allocation3], 0  ;;  %s595_s0 = inlined_call_operand.hbm [shape: f32[2,8,16], index: 0, kind: input, shape index: {}]   ;;  %s596_s1 = inlined_call_operand.hbm [shape: f32[2,4,16], index: 1, kind: output, shape index: {}]  }
   0x1   :  { %8 = vsyncpa [#allocation3 + $0x1], 0 }
   0x2   :  { %9 = vsyncpa [#allocation4], 0 }
   0x3   :  { %11 = vsyncpa [#allocation4 + $0x1], 0  ;;  %s460_s6 = smov 0   ;;  %s462_s7 = smov 0  }
   0x4   :  { %s464_s8 = smov 0   ;;  %s466_s9 = smov 0  }
   0x5   :  { %s468_s10 = smov 0   ;;  %s470_s11 = smov 0  }
   0x6 LB: > { %s256_s12 = sadd.s32 4294967295, %s446_s11   ;;  %s257_s13 = sadd.s32 4294967294, %s446_s11   ;;  %s446_s11 = sphi %s470_s11, %s17_s11   ;;  %s442_s10 = sphi %s468_s10, %s608_s10   ;;  %s438_s9 = sphi %s466_s9, %s607_s9   ;;  %s434_s8 = sphi %s464_s8, %s606_s8   ;;  %s430_s7 = sphi %s462_s7, %s605_s7   ;;  %s426_s6 = sphi %s460_s6, %s604_s6  }
   0x7   : > { %s29_s14 = sadd.s32 1, %s442_s10  ;;  %s38_s15 = sadd.s32 1, %s434_s8 }
   0x8   : > { %p31_p0 = scmp.ge.s32.totalorder %s29_s14, 2  ;;  %p45_p1 = scmp.ne.s32.totalorder %s434_s8, %s430_s7 }
   0x9   : > { %p46_p2 = scmp.eq.s32.totalorder %s446_s11, 0  ;;  %p51_p3 = scmp.ne.s32.totalorder %s430_s7, %s426_s6 }
   0xa   : > { %s610_s14 = smov (%p31_p0, %s29_s14), 0  ;;  %p52_p5 = scmp.eq.s32.totalorder %s256_s12, 0 }
   0xb   : > { %p501_p4 = por %p46_p2, %p45_p1  ;;  %s33_s17 = ssub.s32 %s442_s10, %s610_s14 }
   0xc   : > { %p77_p6 = scmp.eq.s32.totalorder %s256_s12, 1  ;;  %p36_p7 = scmp.eq.s32.totalorder %s33_s17, 0 }
   0xd   : > { %p507_p8 = por %p52_p5, %p51_p3  ;;  %p83_p10 = scmp.eq.s32.totalorder %s257_s13, 1 }
   0xe   : > { %p511_p9 = por %p77_p6, %p45_p1  ;;  %p282_p13 = scmp.lt.s32.totalorder %s446_s11, 2 }
   0xf   : > { %s516_s20 = scalar_select %p36_p7, %s434_s8, %s38_s15  }
  0x10   : > { %p518_p11 = por %p83_p10, %p51_p3  ;;  %s103_s22 = sand.u32 1, %s434_s8  }
  0x11   : > { %s260_s23 = sshll.u32 %s103_s22, 3  ;;  %s261_s24 = sshll.u32 %s442_s10, 7 }
  0x12   : > { %s600_s21 = scalar_select %p518_p11, 1, 0 }
  0x13   : > { %s113_s27 = scalar_lea.hbm %s595_s0, %s261_s24  ;;  %s107_s28 = scalar_lea.vmem [#allocation2], %s260_s23 }
  0x14   : > { %s115_s29 = sshll.u32 %s107_s28, 4  ;;  %p531_p0 = pnand %p282_p13, %p501_p4  ;;  %s116_s29 = int_to_ptr.vmem [resolvable:$true] %s115_s29 }
  0x15   : > { %p262_p1 = scmp.ge.s32.totalorder %s446_s11, 1  ;;  %p120_p2 = scmp.lt.s32.totalorder %s446_s11, 3 }
  0x16   : > { %s104_s2 = scalar_lea.sflag [#allocation3], %s103_s22  ;;  %p340_p3 = pneg %p531_p0 }
  0x17   : > { %s351_s3 = scalar_lea.vmem %s116_s29, 128  ;;  %s448_s4 = smov [#allocation2]  }
  0x18   : > { %p352_p5 = scmp.ne.s32.totalorder %s116_s29, %s351_s3  ;;  %s356_s5 = sshll.u32 %s448_s4, 4  ;;  %s357_s5 = int_to_ptr.vmem [resolvable:$false] %s356_s5 }
  0x19   : > { %s358_s12 = scalar_lea.vmem %s357_s5, 256  ;;  %p359_p10 = scmp.lt.s32.totalorder %s116_s29, %s357_s5 }
  0x1a   : > { %p354_p6 = pnand %p352_p5, %p340_p3  ;;  %p360_p12 = scmp.lt.s32.totalorder %s358_s12, %s351_s3 }
  0x1c   : > { %p355_p7 = pneg %p354_p6  ;;  %p361_p4 = por %p360_p12, %p359_p10 }
  0x1e   : > { %p362_p13 = pnand %p361_p4, %p355_p7 }
  0x20   : > { %365 = shalt.err (!%p362_p13)
}
  0x21   : > { %277 = dma.hbm_to_vmem [thread:$0]  (!%p531_p0), %s113_s27, 128, %s116_s29, %s104_s2  }
  0x22   : > { %p121_p11 = pnand %p262_p1, %p120_p2 }
  0x23   : > { %s546_s13 = sand.u32 (!%p121_p11), 1, %s430_s7  }
  0x24   : > { %124 = sbr.rel (%p121_p11) target bundleno = 90 (0x5a), region = 24  ;;  %s263_s15 = sshll.u32 (!%p121_p11), %s546_s13, 3 }
  0x25   : > { %s127_s16 = scalar_lea.sflag (!%p121_p11), [#allocation3], %s546_s13  ;;  %s130_s17 = scalar_lea.vmem (!%p121_p11), [#allocation2], %s263_s15 }
  0x29   : > { %417 = dma.done.wait (%p507_p8), %s127_s16, 128  }
  0x2a   : > { %419 = vsyncadd (%p507_p8), %s127_s16, 4294967168  ;;  %v149_v0 = vld [vmem:[%s130_s17] sm:$0xf]  ;;  %v150_v2 = vld [vmem:[%s130_s17 + $0x4] sm:$0xf]  ;;  %s264_s22 = sshll.u32 %s546_s13, 2 }
  0x2b   : > { %v265_v1 = vmul.f32 -1.442695, %v149_v0  ;;  %s148_s23 = scalar_lea.vmem [#allocation5], %s264_s22  ;;  %s267_s25 = sshll.u32 %s438_s9, 6  ;;  %vm159_vm0 = vcmask 125952  }
  0x2c   : > { %s176_s24 = sshll.u32 %s148_s23, 4  ;;  %s174_s27 = scalar_lea.hbm %s596_s1, %s267_s25  ;;  %s177_s24 = int_to_ptr.vmem [resolvable:$true] %s176_s24 }
  0x2d   : > { %332 = vpow2.f32 %v265_v1  ;;  %s162_s28 = scalar_lea.sflag [#allocation4], %s546_s13  ;;  %s366_s29 = scalar_lea.vmem %s177_s24, 64 }
  0x2e   : > { %334 = vtanh.f32 %v150_v2  ;;  %p367_p8 = scmp.ne.s32.totalorder %s177_s24, %s366_s29  ;;  %s449_s30 = smov [#allocation5]  }
  0x2f   : > { %s370_s2 = sshll.u32 %s449_s30, 4  ;;  %s371_s2 = int_to_ptr.vmem [resolvable:$false] %s370_s2 }
  0x30   : > { %p368_p11 = pnand %p367_p8, %p511_p9  ;;  %s372_s3 = scalar_lea.vmem %s371_s2, 128 }
  0x31   : > { %p373_p0 = scmp.lt.s32.totalorder %s177_s24, %s371_s2  ;;  %p374_p1 = scmp.lt.s32.totalorder %s372_s3, %s366_s29 }
  0x32   : > { %p369_p12 = pneg %p368_p11 }
  0x33   : > { %p375_p2 = por %p374_p1, %p373_p0 }
  0x35   : > { %p376_p3 = pnand %p375_p2, %p369_p12 }
  0x3a   : > { %v333_v3 = vpop.eup %332 }
  0x3b   : > { %v154_v4 = vadd.f32 1.0, %v333_v3  ;;  %v335_v5 = vpop.eup %334 }
  0x3d   : > { %336 = vrcp.f32 %v154_v4 }
  0x4a   : > { %v337_v6 = vpop.eup %336 }
  0x4b   : > { %v158_v7 = vmul.f32 %v337_v6, %v335_v5 }
  0x4d   : > { %160 = vst.msk [vmem:[%s148_s23] sm:$0xf] %vm159_vm0, %v158_v7 }
  0x4e   : > { %379 = shalt.err (!%p376_p3)
}
  0x4f   : > { %s380_s9 = scalar_lea.hbm %s174_s27, 64  ;;  %s384_s12 = scalar_lea.hbm %s596_s1, 128 }
  0x50   : > { %p381_p5 = scmp.ne.s32.totalorder %s174_s27, %s380_s9  ;;  %p385_p10 = scmp.lt.s32.totalorder %s174_s27, %s596_s1 }
  0x51   : > { %p386_p4 = scmp.lt.s32.totalorder %s384_s12, %s380_s9 }
  0x52   : > { %p382_p6 = pnand %p381_p5, %p511_p9 }
  0x53   : > { %p387_p13 = por %p386_p4, %p385_p10 }
  0x54   : > { %p383_p7 = pneg %p382_p6 }
  0x56   : > { %p388_p8 = pnand %p387_p13, %p383_p7 }
  0x58   : > { %391 = shalt.err (!%p388_p8)
}
  0x59   : > { %272 = dma.vmem_to_hbm [thread:$0]  (%p511_p9), %s177_s24, 64, %s174_s27, %s162_s28  }
  0x5a PF: > { %s188_s16 = sand.u32 1, %s426_s6   ;;  %p602_p11 = scmp.ne.s32.totalorder %s600_s21, 0 }
  0x5b   : > { %p603_p12 = scmp.ge.s32.totalorder %s446_s11, 2  ;;  %s189_s17 = scalar_lea.sflag [#allocation4], %s188_s16 }
  0x5d   : > { %p279_p0 = pnand %p603_p12, %p602_p11 }
  0x5f   : > { %p280_p1 = pneg %p279_p0 }
  0x61   : > { %421 = dma.done.wait (%p280_p1), %s189_s17, 64  }
  0x62   : > { %423 = vsyncadd (%p280_p1), %s189_s17, 4294967232  ;;  %s17_s11 = sadd.s32 1, %s446_s11   ;;  %s604_s6 = smov %s430_s7 }
  0x63   : > { %p14_p2 = scmp.ge.s32.totalorder %s17_s11, 4   ;;  %s605_s7 = smov %s434_s8 }
  0x64   : > { %s606_s8 = smov %s516_s20  ;;  %s607_s9 = smov %s442_s10 }
  0x65   : > { %s608_s10 = smov %s610_s14  ;;  %16 = sbr.rel (!%p14_p2) target bundleno = 6 (0x6), region = 69 }
  0x6a   :  { %194 = vsyncpa [#allocation3], 1 }
  0x6b   :  { %196 = vsyncpa [#allocation3 + $0x1], 1 }
  0x6c   :  { %197 = vsyncpa [#allocation4], 1 }
  0x6d   :  { %199 = vsyncpa [#allocation4 + $0x1], 1 }

</bundles_post_ra>
